<compile_context>
chip_gen: v5e
topology: v5e:2x2
jax: 0.10.0
libtpu: 0.0.40
codegen_flags: <defaults>
</compile_context>

<pallas_src>
import jax
import jax.numpy as jnp
from jax.experimental import pallas as pl
from jax.experimental.pallas import tpu as pltpu

_LANE = 128
_VMEM_LIMIT_BYTES = 32 * 1024 * 1024  # explicit; safe on v5e/v6e (128 MiB) and v7x (64 MiB)


def _sin_kernel(x_ref, o_ref):
    x = x_ref[...]
    # Upcast so range reduction of |30*x| happens in f32 (bf16 range reduction
    # of such large arguments is inaccurate), then cast back to output dtype.
    # TODO(synk): if v7x bundle dumps show VALU (not HBM) as the binding slot,
    # replace jnp.sin with a cheaper range-reduction/shorter polynomial
    # (bf16 outputs only need ~8 mantissa bits).
    y = jnp.sin(30.0 * x.astype(jnp.float32))
    o_ref[...] = y.astype(o_ref.dtype)


def _round_up(v: int, m: int) -> int:
    return ((v + m - 1) // m) * m


def sin30(x: jax.Array, *, target_block_bytes: int = 4 * 1024 * 1024) -> jax.Array:
    """Compute sin(30 * x) elementwise with a Pallas TPU kernel."""
    orig_shape = x.shape
    dtype = x.dtype
    n = x.size
    if n == 0:
        return x

    itemsize = jnp.dtype(dtype).itemsize
    sub = max(8, 32 // itemsize)  # dtype-aware packed-sublane multiple

    cost = pl.CostEstimate(
        flops=5 * n, transcendentals=n, bytes_accessed=2 * n * itemsize
    )
    x_flat = jnp.ravel(x)

    if n % _LANE == 0:
        # ---- main path: lane-dense 2D view [rows, C] ----
        C = _LANE
        for cand in (8192, 4096, 2048, 1024, 512, 256):
            if n % cand == 0:
                C = cand
                break
        rows = n // C
        tc = C

        # Row tile sized for ~target_block_bytes, rounded to the packed-sublane
        # multiple for this dtype.
        tr = max(sub, (target_block_bytes // (C * itemsize)) // sub * sub)
        if pl.cdiv(rows, tr) == 1:
            # Whole array fits one block: split so the parallel grid has >= 2
            # steps and both v7x TensorCores get work (no-op on v5e/v6e).
            tr = rows  # full-extent block is always legal
            if rows >= 2 * sub:
                tr = _round_up(pl.cdiv(rows, 2), sub)  # even-ish row split
            elif C >= 2 * _LANE:
                tc = C // 2  # split along lanes instead

        grid = (pl.cdiv(rows, tr), pl.cdiv(C, tc))

        out2d = pl.pallas_call(
            _sin_kernel,
            out_shape=jax.ShapeDtypeStruct((rows, C), dtype),
            grid_spec=pltpu.PrefetchScalarGridSpec(
                num_scalar_prefetch=0,
                grid=grid,
                in_specs=[pl.BlockSpec((tr, tc), lambda i, j: (i, j))],
                out_specs=pl.BlockSpec((tr, tc), lambda i, j: (i, j)),
            ),
            compiler_params=pltpu.CompilerParams(
                dimension_semantics=("parallel", "parallel"),
                vmem_limit_bytes=_VMEM_LIMIT_BYTES,
            ),
            cost_estimate=cost,
        )(x_flat.reshape(rows, C))
        return out2d.reshape(orig_shape)

    # ---- fallback: flat length not a multiple of 128 ----
    # Stream a (1, n) view; Pallas masks the ragged last block. No padded
    # whole-array copy and no output slice copy.
    tb = _LANE * min(256, pl.cdiv(n, _LANE))
    out = pl.pallas_call(
        _sin_kernel,
        out_shape=jax.ShapeDtypeStruct((1, n), dtype),
        grid_spec=pltpu.PrefetchScalarGridSpec(
            num_scalar_prefetch=0,
            grid=(pl.cdiv(n, tb),),
            in_specs=[pl.BlockSpec((1, tb), lambda i: (0, i))],
            out_specs=pl.BlockSpec((1, tb), lambda i: (0, i)),
        ),
        compiler_params=pltpu.CompilerParams(
            dimension_semantics=("parallel",),
            vmem_limit_bytes=_VMEM_LIMIT_BYTES,
        ),
        cost_estimate=cost,
    )(x_flat.reshape(1, n))
    return out.reshape(orig_shape)


if __name__ == "__main__":
    key = jax.random.PRNGKey(0)
    k1, k2, k3, k4 = jax.random.split(key, 4)

    # Small NCHW input consistent with typical usage of the module.
    x = jax.random.normal(k1, (2, 4, 16, 16), dtype=jnp.float32)
    y = jax.block_until_ready(sin30(x))
    assert y.shape == x.shape and y.dtype == x.dtype
    assert jnp.allclose(y, jnp.sin(30.0 * x), atol=1e-4, rtol=1e-4)

    # Multi-block path (grid > 1 along rows).
    x2 = jax.random.normal(k2, (2, 4, 128, 128), dtype=jnp.float32)
    y2 = jax.block_until_ready(sin30(x2))
    assert jnp.allclose(y2, jnp.sin(30.0 * x2), atol=1e-4, rtol=1e-4)

    # bf16 path (dtype-aware sublane tiling + in-kernel f32 upcast).
    x3 = jax.random.normal(k3, (4, 8, 64, 64), dtype=jnp.bfloat16)
    y3 = jax.block_until_ready(sin30(x3))
    ref3 = jnp.sin(30.0 * x3.astype(jnp.float32)).astype(jnp.bfloat16)
    assert y3.dtype == jnp.bfloat16
    assert jnp.allclose(
        y3.astype(jnp.float32), ref3.astype(jnp.float32), atol=2e-2, rtol=2e-2
    )

    # Ragged fallback path (total size not a multiple of 128; no padded copy).
    x4 = jax.random.normal(k4, (3, 5, 7), dtype=jnp.float32)
    y4 = jax.block_until_ready(sin30(x4))
    assert jnp.allclose(y4, jnp.sin(30.0 * x4), atol=1e-4, rtol=1e-4)

    print("KERNEL_OK")
</pallas_src>

<mosaic_0001>
module attributes {stable_mosaic.version = 11 : i64} {
  func.func @_sin_kernel(%arg0: i32, %arg1: i32, %arg2: memref<1x1024xf32, #tpu.memory_space<vmem>>, %arg3: memref<1x1024xf32, #tpu.memory_space<vmem>>) attributes {dimension_semantics = [#tpu.dimension_semantics<parallel>, #tpu.dimension_semantics<parallel>], iteration_bounds = array<i64: 1, 2>, scalar_prefetch = 0 : i64, scratch_operands = 0 : i64, tpu.core_type = #tpu.core_type<tc>, window_params = [{transform_indices = @transform_0, window_bounds = array<i64: 1, 1024>}, {transform_indices = @transform_1, window_bounds = array<i64: 1, 1024>}]} {
    %c0 = arith.constant 0 : index
    %c0_0 = arith.constant 0 : index
    %0 = vector.load %arg2[%c0, %c0_0] : memref<1x1024xf32, #tpu.memory_space<vmem>>, vector<1x1024xf32>
    %cst = arith.constant 3.000000e+01 : f32
    %1 = vector.broadcast %cst : f32 to vector<1x1024xf32>
    %2 = arith.mulf %1, %0 : vector<1x1024xf32>
    %3 = math.sin %2 : vector<1x1024xf32>
    %c0_1 = arith.constant 0 : index
    %c0_2 = arith.constant 0 : index
    %4 = vector.load %arg3[%c0_1, %c0_2] : memref<1x1024xf32, #tpu.memory_space<vmem>>, vector<1x1024xf32>
    tpu.vector_store %arg3[%c0_1, %c0_2], %3 {strides = array<i32>} : memref<1x1024xf32, #tpu.memory_space<vmem>>, vector<1x1024xf32>,
    return
  }
  func.func @transform_0(%arg0: i32, %arg1: i32) -> (i32, i32) {
    %c0_i32 = arith.constant 0 : i32
    return %arg0, %arg1 : i32, i32
  }
  func.func @transform_1(%arg0: i32, %arg1: i32) -> (i32, i32) {
    %c0_i32 = arith.constant 0 : i32
    return %arg0, %arg1 : i32, i32
  }
}

</mosaic_0001>

<bundles_post_ra>
// kernel: tpu_custom_call.1
= control target key start
LH: loop header
LB: loop body
LE: loop exit
PB: predicated region body
PF: predicated region fallthrough
CT: control target
= control target key end

     0   :  { %6 = vsyncpa [#allocation3], 0  ;;  %s798_s0 = inlined_call_operand.hbm [shape: f32[1,2048], index: 0, kind: input, shape index: {}]   ;;  %s799_s1 = inlined_call_operand.hbm [shape: f32[1,2048], index: 1, kind: output, shape index: {}]  }
   0x1   :  { %8 = vsyncpa [#allocation3 + $0x1], 0 }
   0x2   :  { %9 = vsyncpa [#allocation4], 0 }
   0x3   :  { %11 = vsyncpa [#allocation4 + $0x1], 0  ;;  %s628_s6 = smov 0   ;;  %s630_s7 = smov 0  }
   0x4   :  { %s632_s8 = smov 0   ;;  %s634_s9 = smov 0  }
   0x5   :  { %s636_s10 = smov 0   ;;  %s638_s11 = smov 0  }
   0x6 LB: > { %s412_s12 = sadd.s32 4294967295, %s609_s11   ;;  %s413_s13 = sadd.s32 4294967294, %s609_s11   ;;  %s609_s11 = sphi %s638_s11, %s17_s11   ;;  %s605_s10 = sphi %s636_s10, %s808_s10   ;;  %s601_s9 = sphi %s634_s9, %s807_s9   ;;  %s597_s8 = sphi %s632_s8, %s806_s8   ;;  %s593_s7 = sphi %s630_s7, %s805_s7   ;;  %s589_s6 = sphi %s628_s6, %s804_s6  }
   0x7   : > { %s26_s14 = sadd.s32 1, %s605_s10  ;;  %s38_s15 = sadd.s32 1, %s597_s8 }
   0x8   : > { %p27_p0 = scmp.ge.s32.totalorder %s26_s14, 2  ;;  %p45_p1 = scmp.ne.s32.totalorder %s597_s8, %s593_s7 }
   0x9   : > { %p46_p2 = scmp.eq.s32.totalorder %s609_s11, 0  ;;  %p51_p3 = scmp.ne.s32.totalorder %s593_s7, %s589_s6 }
   0xa   : > { %s810_s14 = smov (%p27_p0, %s26_s14), 0  ;;  %p52_p5 = scmp.eq.s32.totalorder %s412_s12, 0 }
   0xb   : > { %p669_p4 = por %p46_p2, %p45_p1  ;;  %s34_s17 = ssub.s32 %s605_s10, %s810_s14 }
   0xc   : > { %p77_p6 = scmp.eq.s32.totalorder %s412_s12, 1  ;;  %p36_p7 = scmp.eq.s32.totalorder %s34_s17, 0 }
   0xd   : > { %p675_p8 = por %p52_p5, %p51_p3  ;;  %p83_p10 = scmp.eq.s32.totalorder %s413_s13, 1 }
   0xe   : > { %p679_p9 = por %p77_p6, %p45_p1  ;;  %p415_p12 = scmp.ge.s32.totalorder %s609_s11, 2 }
   0xf   : > { %s684_s20 = scalar_select %p36_p7, %s597_s8, %s38_s15  }
  0x10   : > { %p686_p11 = por %p83_p10, %p51_p3  ;;  %p440_p13 = scmp.lt.s32.totalorder %s609_s11, 2 }
  0x11   : > { %s103_s22 = sand.u32 1, %s597_s8   ;;  %s417_s24 = sshll.u32 %s605_s10, 3 }
  0x12   : > { %s416_s23 = sshll.u32 %s103_s22, 3  ;;  %s113_s27 = scalar_lea.hbm %s798_s0, %s417_s24 }
  0x13   : > { %s107_s28 = scalar_lea.vmem [#allocation2], %s416_s23  ;;  %s115_s30 = sshll.u32 %s113_s27, 4  ;;  %s116_s30 = int_to_ptr.hbm [resolvable:$true] %s115_s30 }
  0x14   : > { %s117_s29 = sshll.u32 %s107_s28, 4  ;;  %p433_p0 = pnand %p440_p13, %p669_p4  ;;  %s118_s29 = int_to_ptr.vmem [resolvable:$true] %s117_s29 }
  0x15   : > { %p418_p1 = scmp.ge.s32.totalorder %s609_s11, 1  ;;  %p122_p2 = scmp.lt.s32.totalorder %s609_s11, 3 }
  0x16   : > { %s104_s2 = scalar_lea.sflag [#allocation3], %s103_s22 }
  0x17   : > { %435 = dma.hbm_to_vmem [thread:$0]  (!%p433_p0), %s116_s30, 128, %s118_s29, %s104_s2  }
  0x18   : > { %p123_p3 = pnand %p418_p1, %p122_p2 }
  0x19   : > { %s702_s3 = sand.u32 (!%p123_p3), 1, %s593_s7  }
  0x1a   : > { %126 = sbr.rel (%p123_p3) target bundleno = 134 (0x86), region = 24  ;;  %s419_s4 = sshll.u32 (!%p123_p3), %s702_s3, 3 }
  0x1b   : > { %s129_s5 = scalar_lea.sflag (!%p123_p3), [#allocation3], %s702_s3  ;;  %s132_s12 = scalar_lea.vmem (!%p123_p3), [#allocation2], %s419_s4 }
  0x1f   : > { %580 = dma.done.wait (%p675_p8), %s129_s5, 128  }
  0x20   : > { %582 = vsyncadd (%p675_p8), %s129_s5, 4294967168  ;;  %v154_v0 = vld [vmem:[%s132_s12] sm:$0xff]  ;;  %v611_v13 = vmov 683565275   ;;  %v612_v15 = vmov 2475754826  }
  0x21   : > { %v712_v1 = vmul.f32 30.0, %v154_v0  ;;  %v613_v17 = vmov 2131351028   ;;  %v614_v19 = vmov 2102212464   ;;  %s425_s13 = sshll.u32 %s601_s9, 3 }
  0x22   : > { %v615_v21 = vmov 920167782   ;;  %v616_v27 = vmov 1326507024   ;;  %s325_s17 = scalar_lea.hbm %s799_s1, %s425_s13  ;;  %s151_s18 = scalar_lea.vmem [#allocation5], %s419_s4 }
  0x23   : > { %v159_v2 = vand.u32 2139095040, %v712_v1  ;;  %v156_v4 = vand.u32 2147483647, %v712_v1  ;;  %vm158_vm12 = vcmp.lt.s32.totalorder %v712_v1, 0  ;;  %s327_s22 = sshll.u32 %s151_s18, 4  ;;  %s329_s23 = sshll.u32 %s325_s17, 4  ;;  %s328_s22 = int_to_ptr.vmem [resolvable:$true] %s327_s22  ;;  %s330_s23 = int_to_ptr.hbm [resolvable:$true] %s329_s23 }
  0x24   : > { %s313_s9 = scalar_lea.sflag [#allocation4], %s702_s3  ;;  %s541_s24 = sshra.s32 %s330_s23, 4  ;;  %s542_s24 = int_to_ptr.hbm [resolvable:$true] %s541_s24 }
  0x25   : > { %v160_v3 = vshrl.u32 %v159_v2, 23  ;;  %v163_v7 = vand.u32 8388607, %v156_v4  ;;  %v617_v2 = vmov 0   ;;  %vm157_vm13 = vcmp.le.f32.partialorder %v156_v4, 0.7853982  ;;  %p548_p7 = scmp.lt.s32.totalorder %s542_s24, %s799_s1 }
  0x26   : > { %s543_s25 = scalar_lea.hbm %s542_s24, 8  ;;  %s547_s28 = scalar_lea.hbm %s799_s1, 16 }
  0x27   : > { %v421_v5 = vadd.s32 4294967169, %v160_v3  ;;  %v164_v10 = vor.u32 8388608, %v163_v7  ;;  %p544_p4 = scmp.ne.s32.totalorder %s542_s24, %s543_s25  ;;  %p549_p8 = scmp.lt.s32.totalorder %s547_s28, %s543_s25 }
  0x29   : > { %v166_v6 = vadd.s32 1, %v421_v5  ;;  %v721_v29 = vshll.u32 %v164_v10, 8  ;;  %p545_p5 = pnand %p544_p4, %p679_p9  ;;  %p550_p10 = por %p549_p8, %p548_p7 }
  0x2b   : > { %vm167_vm0 = vcmp.gt.s32.totalorder %v166_v6, 0  ;;  %v205_v41 = vand.u32 65535, %v721_v29  ;;  %v206_v42 = vshrl.u32 %v721_v29, 16  ;;  %p546_p6 = pneg %p545_p5 }
  0x2c   : > { %v168_v8 = vsel %vm167_vm0, %v166_v6, 0 }
  0x2d   : > { %v170_v9 = vand.u32 31, %v168_v8  ;;  %v718_v11 = vshrl.u32 %v168_v8, 5  ;;  %p551_p13 = pnand %p550_p10, %p546_p6 }
  0x2f   : > { %v171_v12 = vsub.s32 32, %v170_v9  ;;  %v173_v14 = vshll.u32 %v611_v13, %v170_v9  ;;  %v176_v16 = vshll.u32 %v612_v15, %v170_v9  ;;  %v179_v18 = vshll.u32 %v613_v17, %v170_v9 }
  0x30   : > { %v182_v20 = vshll.u32 %v614_v19, %v170_v9  ;;  %v185_v22 = vshll.u32 %v615_v21, %v170_v9  ;;  %vm188_vm1 = vcmp.lt.s32.totalorder %v718_v11, 1  ;;  %vm191_vm2 = vcmp.lt.s32.totalorder %v718_v11, 4 }
  0x31   : > { %v174_v23 = vshrl.u32 %v612_v15, %v171_v12  ;;  %v177_v24 = vshrl.u32 %v613_v17, %v171_v12  ;;  %v180_v25 = vshrl.u32 %v614_v19, %v171_v12  ;;  %v183_v26 = vshrl.u32 %v615_v21, %v171_v12 }
  0x32   : > { %v186_v28 = vshrl.u32 %v616_v27, %v171_v12  ;;  %vm190_vm3 = vcmp.lt.s32.totalorder %v718_v11, 3  ;;  %vm189_vm4 = vcmp.lt.s32.totalorder %v718_v11, 2  ;;  %v172_v49 = vshrl.u32 %v611_v13, %v171_v12 }
  0x33   : > { %v175_v30 = vor.u32 %v174_v23, %v173_v14  ;;  %v178_v31 = vor.u32 %v177_v24, %v176_v16  ;;  %v181_v32 = vor.u32 %v180_v25, %v179_v18  ;;  %v184_v33 = vor.u32 %v183_v26, %v182_v20 }
  0x34   : > { %v187_v34 = vor.u32 %v186_v28, %v185_v22 }
  0x35   : > { %v196_v35 = vsel %vm188_vm1, %v175_v30, %v178_v31  ;;  %v200_v36 = vsel %vm188_vm1, %v178_v31, %v181_v32  ;;  %v197_v37 = vsel %vm191_vm2, %v184_v33, 920167782  ;;  %v192_v62 = vsel %vm188_vm1, %v172_v49, %v175_v30 }
  0x36   : > { %v201_v38 = vsel %vm191_vm2, %v187_v34, 1326507024  ;;  %v198_v39 = vsel %vm190_vm3, %v181_v32, %v197_v37  ;;  %v193_v0 = vsel %vm191_vm2, %v181_v32, 2102212464  ;;  %vm299_vm1 = vweird.f32 %v712_v1 }
  0x37   : > { %v202_v40 = vsel %vm190_vm3, %v184_v33, %v201_v38  ;;  %v199_v43 = vsel %vm189_vm4, %v196_v35, %v198_v39  ;;  %v194_v13 = vsel %vm190_vm3, %v178_v31, %v193_v0 }
  0x38   : > { %v203_v44 = vsel %vm189_vm4, %v200_v36, %v202_v40  ;;  %v229_v47 = vand.u32 65535, %v199_v43  ;;  %v230_v48 = vshrl.u32 %v199_v43, 16  ;;  %v195_v21 = vsel %vm189_vm4, %v192_v62, %v194_v13 }
  0x39   : > { %v207_v45 = vand.u32 65535, %v203_v44  ;;  %v208_v46 = vshrl.u32 %v203_v44, 16  ;;  %v249_v25 = vmul.u32 %v721_v29, %v195_v21 }
  0x3a   : > { %v231_v53 = vmul.u32 %v229_v47, %v205_v41  ;;  %v232_v54 = vmul.u32 %v230_v48, %v205_v41  ;;  %v233_v55 = vmul.u32 %v229_v47, %v206_v42  ;;  %v234_v59 = vmul.u32 %v230_v48, %v206_v42 }
  0x3b   : > { %v209_v50 = vmul.u32 %v207_v45, %v205_v41  ;;  %v210_v51 = vmul.u32 %v208_v46, %v205_v41  ;;  %v211_v52 = vmul.u32 %v207_v45, %v206_v42  ;;  %v212_v56 = vmul.u32 %v208_v46, %v206_v42 }
  0x3c   : > { %v235_v60 = vshll.u32 %v232_v54, 16  ;;  %v237_v61 = vshll.u32 %v233_v55, 16  ;;  %v236_v10 = vshrl.u32 %v232_v54, 16  ;;  %v238_v17 = vshrl.u32 %v233_v55, 16 }
  0x3d   : > { %v213_v57 = vshll.u32 %v210_v51, 16  ;;  %v215_v58 = vshll.u32 %v211_v52, 16  ;;  %v214_v6 = vshrl.u32 %v210_v51, 16  ;;  %v216_v14 = vshrl.u32 %v211_v52, 16 }
  0x3e   : > { %vm239_vm6 = vc.u32 %v231_v53, %v235_v60  ;;  %v241_v5 = vadd.s32 %v235_v60, %v231_v53 }
  0x3f   : > { %vm217_vm5 = vc.u32 %v209_v50, %v213_v57  ;;  %v219_v63 = vadd.s32 %v213_v57, %v209_v50  ;;  %v240_v8 = vsel %vm239_vm6, 1, %v617_v2 }
  0x40   : > { %v218_v3 = vsel %vm217_vm5, 1, %v617_v2  ;;  %v242_v12 = vadd.s32 %v240_v8, %v234_v59  ;;  %vm243_vm8 = vc.u32 %v241_v5, %v237_v61  ;;  %v245_v20 = vadd.s32 %v241_v5, %v237_v61 }
  0x41   : > { %v220_v7 = vadd.s32 %v218_v3, %v212_v56  ;;  %vm221_vm7 = vc.u32 %v219_v63, %v215_v58  ;;  %v244_v16 = vsel %vm243_vm8, 1, %v617_v2 }
  0x42   : > { %v222_v9 = vsel %vm221_vm7, 1, %v617_v2  ;;  %v246_v18 = vadd.s32 %v244_v16, %v242_v12 }
  0x43   : > { %v224_v15 = vadd.s32 %v222_v9, %v220_v7 }
  0x44   : > { %v247_v22 = vadd.s32 %v246_v18, %v236_v10 }
  0x45   : > { %v225_v19 = vadd.s32 %v224_v15, %v214_v6 }
  0x46   : > { %v248_v24 = vadd.s32 %v247_v22, %v238_v17 }
  0x47   : > { %v226_v23 = vadd.s32 %v225_v19, %v216_v14 }
  0x48   : > { %v252_v26 = vadd.s32 1, %v248_v24 }
  0x49   : > { %vm251_vm9 = vc.u32 %v226_v23, %v245_v20  ;;  %v250_v11 = vadd.s32 %v245_v20, %v226_v23 }
  0x4a   : > { %v253_v27 = vsel %vm251_vm9, %v252_v26, %v248_v24 }
  0x4b   : > { %v254_v28 = vadd.s32 %v253_v27, %v249_v25 }
  0x4d   : > { %v255_v30 = vadd.s32 536870912, %v254_v28 }
  0x4f   : > { %v256_v31 = vshrl.u32 %v255_v30, 30 }
  0x51   : > { %v257_v32 = vshll.u32 %v256_v31, 30  ;;  %v280_v49 = vsub.s32 4, %v256_v31 }
  0x53   : > { %v258_v33 = vsub.s32 %v254_v28, %v257_v32  ;;  %v281_v52 = vsel %vm158_vm12, %v280_v49, %v256_v31 }
  0x54   : > { %v283_v55 = vsel %vm157_vm13, 0, %v281_v52 }
  0x55   : > { %vm259_vm10 = vcmp.lt.s32.totalorder %v258_v33, 0  ;;  %v260_v34 = vsub.s32 0, %v258_v33  ;;  %v300_v60 = vadd.s32 3, %v283_v55 }
  0x57   : > { %v261_v35 = vsel %vm259_vm10, %v260_v34, %v258_v33  ;;  %v301_v2 = vand.u32 3, %v300_v60 }
  0x58   : > { %v262_v36 = vclz %v261_v35 }
  0x59   : > { %vm306_vm14 = vcmp.eq.s32.totalorder %v301_v2, 2  ;;  %vm303_vm15 = vcmp.eq.s32.totalorder %v301_v2, 0  ;;  %vm302_vm0 = vcmp.lt.s32.totalorder %v301_v2, 2 }
  0x5a   : > { %v422_v37 = vadd.s32 4294967294, %v262_v36 }
  0x5c   : > { %vm423_vm11 = vcmp.lt.s32.totalorder %v422_v37, 0 }
  0x5d   : > { %v265_v38 = vsel %vm423_vm11, 0, %v422_v37 }
  0x5e   : > { %v266_v39 = vsub.s32 32, %v265_v38  ;;  %v267_v40 = vshll.u32 %v258_v33, %v265_v38  ;;  %v270_v41 = vsub.s32 4294967266, %v265_v38 }
  0x60   : > { %v268_v29 = vshrl.u32 %v250_v11, %v266_v39  ;;  %v271_v42 = vadd.s32 127, %v270_v41 }
  0x62   : > { %v269_v43 = vor.u32 %v268_v29, %v267_v40  ;;  %v272_v44 = vshll.u32 %v271_v42, 23 }
  0x64   : > { %v273_v45 = vor.u32 4788187, %v272_v44  ;;  %v276_v46 = vcvt.s32.f32 %v269_v43 }
  0x66   : > { %v274_v47 = vand.u32 2147483647, %v273_v45 }
  0x68   : > { %v277_v48 = vmul.f32 %v276_v46, %v274_v47 }
  0x6a   : > { %v278_v50 = vxor.u32 2147483648, %v277_v48 }
  0x6c   : > { %v279_v51 = vsel %vm158_vm12, %v278_v50, %v277_v48 }
  0x6d   : > { %v282_v53 = vsel %vm157_vm13, %v712_v1, %v279_v51 }
  0x6e   : > { %v284_v54 = vmul.f32 %v282_v53, %v282_v53 }
  0x70   : > { %v285_v56 = vmul.f32 -0.001358992, %v284_v54  ;;  %v292_v57 = vmul.f32 -0.00019511016, %v284_v54 }
  0x72   : > { %v286_v58 = vadd.f32 0.041655596, %v285_v56  ;;  %v293_v59 = vadd.f32 0.008332121, %v292_v57 }
  0x74   : > { %v287_v61 = vmul.f32 %v286_v58, %v284_v54  ;;  %v294_v62 = vmul.f32 %v293_v59, %v284_v54 }
  0x76   : > { %v288_v63 = vadd.f32 -0.4999988, %v287_v61  ;;  %v295_v0 = vadd.f32 -0.16666654, %v294_v62 }
  0x78   : > { %v289_v4 = vmul.f32 %v288_v63, %v284_v54  ;;  %v296_v3 = vmul.f32 %v295_v0, %v284_v54 }
  0x7a   : > { %v290_v5 = vadd.f32 1.0, %v289_v4  ;;  %v297_v6 = vadd.f32 1.0, %v296_v3 }
  0x7c   : > { %v298_v7 = vmul.f32 %v297_v6, %v282_v53  ;;  %v307_v8 = vxor.u32 2147483648, %v290_v5 }
  0x7e   : > { %v304_v9 = vxor.u32 2147483648, %v298_v7  ;;  %v308_v10 = vsel %vm306_vm14, %v307_v8, %v298_v7 }
  0x80   : > { %v305_v12 = vsel %vm303_vm15, %v290_v5, %v304_v9 }
  0x81   : > { %v309_v13 = vsel %vm302_vm0, %v305_v12, %v308_v10 }
  0x82   : > { %v310_v14 = vsel %vm299_vm1, nan, %v309_v13 }
  0x83   : > { %311 = vst [vmem:[%s151_s18] sm:$0xff] %v310_v14 }
  0x84   : > { %554 = shalt.err (!%p551_p13)
}
  0x85   : > { %430 = dma.vmem_to_hbm [thread:$0]  (%p679_p9), %s328_s22, 128, %s330_s23, %s313_s9  }
  0x86 PF: > { %s341_s2 = sand.u32 1, %s589_s6   ;;  %p437_p0 = pnand %p415_p12, %p686_p11 }
  0x87   : > { %s342_s3 = scalar_lea.sflag [#allocation4], %s341_s2 }
  0x88   : > { %p438_p1 = pneg %p437_p0 }
  0x8a   : > { %584 = dma.done.wait (%p438_p1), %s342_s3, 128  }
  0x8b   : > { %586 = vsyncadd (%p438_p1), %s342_s3, 4294967168  ;;  %s17_s11 = sadd.s32 1, %s609_s11   ;;  %s804_s6 = smov %s593_s7 }
  0x8c   : > { %p14_p2 = scmp.ge.s32.totalorder %s17_s11, 4   ;;  %s805_s7 = smov %s597_s8 }
  0x8d   : > { %s806_s8 = smov %s684_s20  ;;  %s807_s9 = smov %s605_s10 }
  0x8e   : > { %s808_s10 = smov %s810_s14  ;;  %16 = sbr.rel (!%p14_p2) target bundleno = 6 (0x6), region = 69 }
  0x93   :  { %348 = vsyncpa [#allocation3], 1 }
  0x94   :  { %350 = vsyncpa [#allocation3 + $0x1], 1 }
  0x95   :  { %351 = vsyncpa [#allocation4], 1 }
  0x96   :  { %353 = vsyncpa [#allocation4 + $0x1], 1 }

</bundles_post_ra>
